<compile_context>
chip_gen: v7x
topology: tpu7x:2x2x1
jax: 0.10.0
libtpu: 0.0.40
codegen_flags: <defaults>
</compile_context>

<pallas_src>
import functools

import jax
import jax.numpy as jnp
from jax.experimental import pallas as pl
from jax.experimental.pallas import tpu as pltpu

LANES = 128            # vreg lane width; last dim of every block
MAX_BLOCK_ROWS = 1024  # (1024,128) f32 block = 512 KiB; 2x (in+out) double-buffered ~2 MiB
LN2 = 0.6931471805599453


def _block_rows(rows):
    """Largest sublane-aligned (multiple of 8) row tile, capped at MAX_BLOCK_ROWS."""
    return min(MAX_BLOCK_ROWS, -(-rows // 8) * 8)


# ---------------------------------------------------------------------------
# Fused training kernel: phase 0 = global max|x| + scale bookkeeping,
#                        phase 1 = elementwise scale.
# ---------------------------------------------------------------------------
def _bn_clamp_train_kernel(scale_ref, x_ref, y_ref, sf_ref, sr_ref,
                           acc_ref, inv_ref, *, momentum, block_rows, last_rows):
    phase = pl.program_id(0)
    blk = pl.program_id(1)
    nblk = pl.num_programs(1)

    # ----------------------- phase 0: max-|x| reduction ---------------------
    @pl.when(phase == 0)
    def _reduce_phase():
        @pl.when(blk == 0)
        def _init():
            acc_ref[...] = jnp.zeros_like(acc_ref)

        # Read x in its native dtype; cast per-vreg on the VPU (no HBM copy).
        absx = jnp.abs(x_ref[...].astype(jnp.float32))
        if last_rows != block_rows:  # static: ragged final block -> mask garbage rows
            rows_in_blk = jnp.where(blk == nblk - 1, last_rows, block_rows)
            row_ids = jax.lax.broadcasted_iota(jnp.int32, (block_rows, LANES), 0)
            absx = jnp.where(row_ids < rows_in_blk, absx, 0.0)

        # Fold (block_rows,128) -> (8,128) with elementwise VPU maximums; the
        # single cross-lane/sublane (XLU) reduce happens once, at the last block.
        folded = jnp.max(absx.reshape(block_rows // 8, 8, LANES), axis=0)
        acc_ref[...] = jnp.maximum(acc_ref[...], folded)

        @pl.when(blk == nblk - 1)
        def _finalize():
            max_value = jnp.max(acc_ref[...], axis=(0, 1), keepdims=True)      # (1,1)
            sf = momentum * scale_ref[0, 0] + (1.0 - momentum) * max_value     # (1,1) f32
            sr = jnp.ceil(jnp.log2(sf))
            # 2.0 ** k computed as exp(k * ln2); jnp.exp lowers to the EUP.
            sf = jnp.ceil(sf * jnp.exp((7.0 - sr) * LN2)) * jnp.exp((sr - 7.0) * LN2)
            sf_ref[...] = sf
            sr_ref[...] = sr
            # NOTE: like the PyTorch module, no guard for sf == 0 (assumed > 0).
            inv_ref[...] = 1.0 / sf   # exact divide (approx recip would break tolerance)

    # ----------------------------- phase 1: scale ---------------------------
    @pl.when(phase == 1)
    def _scale_phase():
        y_ref[...] = (x_ref[...].astype(jnp.float32) * inv_ref[...]).astype(y_ref.dtype)


def _bn_clamp_train(x2d, scale_float, momentum):
    rows, _ = x2d.shape
    br = _block_rows(rows)
    nblk = pl.cdiv(rows, br)
    last_rows = rows - (nblk - 1) * br

    kernel = functools.partial(_bn_clamp_train_kernel, momentum=float(momentum),
                               block_rows=br, last_rows=last_rows)
    y2d, sf, sr = pl.pallas_call(
        kernel,
        grid=(2, nblk),
        in_specs=[
            pl.BlockSpec((1, 1), lambda p, j: (0, 0),
                         memory_space=pltpu.MemorySpace.SMEM),     # old scale_float
            pl.BlockSpec((br, LANES), lambda p, j: (j, 0)),        # x (read each phase)
        ],
        out_specs=(
            # y: block index stays 0 for all of phase 0 (never flushed with
            # garbage), then tracks the block axis in phase 1.
            pl.BlockSpec((br, LANES), lambda p, j: (j * p, 0)),
            pl.BlockSpec((1, 1), lambda p, j: (0, 0)),             # new scale_float
            pl.BlockSpec((1, 1), lambda p, j: (0, 0)),             # new scale_range
        ),
        out_shape=(
            jax.ShapeDtypeStruct((rows, LANES), x2d.dtype),
            jax.ShapeDtypeStruct((1, 1), jnp.float32),
            jax.ShapeDtypeStruct((1, 1), jnp.float32),
        ),
        scratch_shapes=[
            pltpu.VMEM((8, LANES), jnp.float32),   # running max-|x| accumulator
            pltpu.VMEM((1, 1), jnp.float32),       # 1 / new_scale_float
        ],
        # Phase axis is sequential and the block axis carries the reduction
        # accumulator, so both are "arbitrary".
        compiler_params=pltpu.CompilerParams(
            dimension_semantics=("arbitrary", "arbitrary")),
    )(jnp.reshape(scale_float.astype(jnp.float32), (1, 1)), x2d)
    return y2d, sf[0, 0], sr[0, 0]


# ---------------------------------------------------------------------------
# Eval-mode kernel: tiled elementwise scale (buffers are frozen).
# ---------------------------------------------------------------------------
def _scale_kernel(inv_ref, x_ref, y_ref):
    y_ref[...] = (x_ref[...].astype(jnp.float32) * inv_ref[0, 0]).astype(y_ref.dtype)


def _scale_only(x2d, inv_scale):
    rows, _ = x2d.shape
    br = _block_rows(rows)
    nblk = pl.cdiv(rows, br)
    inv = jnp.reshape(inv_scale.astype(jnp.float32), (1, 1))
    return pl.pallas_call(
        _scale_kernel,
        grid=(nblk,),
        in_specs=[
            pl.BlockSpec((1, 1), lambda j: (0, 0),
                         memory_space=pltpu.MemorySpace.SMEM),
            pl.BlockSpec((br, LANES), lambda j: (j, 0)),
        ],
        out_specs=pl.BlockSpec((br, LANES), lambda j: (j, 0)),
        out_shape=jax.ShapeDtypeStruct((rows, LANES), x2d.dtype),
        # Purely elementwise: shard blocks across both v7x TensorCores.
        compiler_params=pltpu.CompilerParams(dimension_semantics=("parallel",)),
    )(inv, x2d)


# ---------------------------------------------------------------------------
# Wrapper reproducing BatchNorm_Clamp.forward semantics (functional buffers).
# ---------------------------------------------------------------------------
@functools.partial(jax.jit, static_argnames=("momentum", "training"))
def batchnorm_clamp(x, scale_float, scale_range, momentum=0.9, training=True):
    """Returns (y, new_scale_float, new_scale_range)."""
    orig_shape = x.shape
    total = x.size

    if total % LANES == 0:
        # Lane-aligned flatten: free reshape, no pad, no tail slice.
        x2d = jnp.reshape(x, (total // LANES, LANES))

        def back(y2d):
            return jnp.reshape(y2d, orig_shape)
    else:
        # TODO(synk): ragged (non multiple-of-128) sizes still pay an XLA
        # pad + slice pass; could be folded into the kernel with masked stores.
        rows = -(-total // LANES)
        pad = rows * LANES - total
        x2d = jnp.reshape(jnp.pad(jnp.reshape(x, (total,)), (0, pad)), (rows, LANES))

        def back(y2d):
            return jnp.reshape(jnp.reshape(y2d, (-1,))[:total], orig_shape)

    if training:
        y2d, new_sf, new_sr = _bn_clamp_train(x2d, scale_float, momentum)
        return back(y2d), new_sf, new_sr

    y2d = _scale_only(x2d, 1.0 / scale_float.astype(jnp.float32))
    return back(y2d), scale_float, scale_range


if __name__ == "__main__":
    key = jax.random.PRNGKey(0)
    # NCHW input, consistent with typical use of the module after a conv.
    x = jax.random.normal(key, (2, 4, 16, 16), dtype=jnp.float32)

    # Buffers as registered in __init__ (deterministic init, no checkpoint).
    scale_float = jnp.float32(1.0)
    scale_range = jnp.float32(1.0)

    # Training step (updates the buffers).
    y, new_sf, new_sr = batchnorm_clamp(
        x, scale_float, scale_range, momentum=0.9, training=True)
    jax.block_until_ready((y, new_sf, new_sr))

    # Pure-JAX reference of the forward semantics.
    max_value = jnp.max(jnp.abs(x))
    sf_ref = 0.9 * scale_float + 0.1 * max_value
    sr_ref = jnp.ceil(jnp.log2(sf_ref))
    sf_ref = jnp.ceil(sf_ref * 2.0 ** (7.0 - sr_ref)) * 2.0 ** (sr_ref - 7.0)
    y_ref = x * (1.0 / sf_ref)

    assert jnp.allclose(new_sr, sr_ref), (new_sr, sr_ref)
    assert jnp.allclose(new_sf, sf_ref, rtol=1e-5, atol=1e-6), (new_sf, sf_ref)
    assert jnp.allclose(y, y_ref, rtol=1e-5, atol=1e-6), "y mismatch"

    # Eval step (buffers frozen).
    y_eval, sf_e, sr_e = batchnorm_clamp(
        x, new_sf, new_sr, momentum=0.9, training=False)
    jax.block_until_ready(y_eval)
    assert jnp.allclose(y_eval, x * (1.0 / new_sf), rtol=1e-5, atol=1e-6)
    assert bool(sf_e == new_sf) and bool(sr_e == new_sr)

    print("KERNEL_OK")
</pallas_src>

<mosaic_0001>
module attributes {stable_mosaic.version = 11 : i64} {
  func.func @_bn_clamp_train_kernel(%arg0: i32, %arg1: i32, %arg2: memref<1x1xf32, #tpu.memory_space<smem>>, %arg3: memref<16x128xf32, #tpu.memory_space<vmem>>, %arg4: memref<16x128xf32, #tpu.memory_space<vmem>>, %arg5: memref<1x1xf32, #tpu.memory_space<vmem>>, %arg6: memref<1x1xf32, #tpu.memory_space<vmem>>, %arg7: memref<8x128xf32, #tpu.memory_space<vmem>>, %arg8: memref<1x1xf32, #tpu.memory_space<vmem>>) attributes {dimension_semantics = [#tpu.dimension_semantics<arbitrary>, #tpu.dimension_semantics<arbitrary>], iteration_bounds = array<i64: 2, 1>, scalar_prefetch = 0 : i64, scratch_operands = 2 : i64, tpu.core_type = #tpu.core_type<tc>, window_params = [{transform_indices = @transform_0, window_bounds = array<i64: 1, 1>}, {transform_indices = @transform_1, window_bounds = array<i64: 16, 128>}, {transform_indices = @transform_2, window_bounds = array<i64: 16, 128>}, {pipeline_mode = #tpu.pipeline_mode<synchronous>, transform_indices = @transform_3, window_bounds = array<i64: 1, 1>}, {pipeline_mode = #tpu.pipeline_mode<synchronous>, transform_indices = @transform_4, window_bounds = array<i64: 1, 1>}]} {
    %c0_i32 = arith.constant 0 : i32
    %0 = arith.cmpi eq, %arg0, %c0_i32 : i32
    %1 = arith.extui %0 : i1 to i32
    %c0_i32_0 = arith.constant 0 : i32
    %2 = arith.cmpi ne, %1, %c0_i32_0 : i32
    scf.if %2 {
      %c0_i32_2 = arith.constant 0 : i32
      %6 = arith.cmpi eq, %arg1, %c0_i32_2 : i32
      %7 = arith.extui %6 : i1 to i32
      %c0_i32_3 = arith.constant 0 : i32
      %8 = arith.cmpi ne, %7, %c0_i32_3 : i32
      scf.if %8 {
        %cst_11 = arith.constant 0.000000e+00 : f32
        %19 = vector.broadcast %cst_11 : f32 to vector<8x128xf32>
        %c0_12 = arith.constant 0 : index
        %c0_13 = arith.constant 0 : index
        %20 = vector.load %arg7[%c0_12, %c0_13] : memref<8x128xf32, #tpu.memory_space<vmem>>, vector<8x128xf32>
        tpu.vector_store %arg7[%c0_12, %c0_13], %19 {strides = array<i32>} : memref<8x128xf32, #tpu.memory_space<vmem>>, vector<8x128xf32>,
      } else {
      }
      %c0 = arith.constant 0 : index
      %c0_4 = arith.constant 0 : index
      %9 = vector.load %arg3[%c0, %c0_4] : memref<16x128xf32, #tpu.memory_space<vmem>>, vector<16x128xf32>
      %10 = math.absf %9 : vector<16x128xf32>
      %11 = vector.shape_cast %10 : vector<16x128xf32> to vector<2x8x128xf32>
      %cst = arith.constant dense<0xFF800000> : vector<8x128xf32>
      %12 = vector.multi_reduction <maximumf>, %11, %cst [0] : vector<2x8x128xf32> to vector<8x128xf32>
      %c0_5 = arith.constant 0 : index
      %c0_6 = arith.constant 0 : index
      %13 = vector.load %arg7[%c0_5, %c0_6] : memref<8x128xf32, #tpu.memory_space<vmem>>, vector<8x128xf32>
      %14 = arith.maximumf %13, %12 : vector<8x128xf32>
      %c0_7 = arith.constant 0 : index
      %c0_8 = arith.constant 0 : index
      %15 = vector.load %arg7[%c0_7, %c0_8] : memref<8x128xf32, #tpu.memory_space<vmem>>, vector<8x128xf32>
      tpu.vector_store %arg7[%c0_7, %c0_8], %14 {strides = array<i32>} : memref<8x128xf32, #tpu.memory_space<vmem>>, vector<8x128xf32>,
      %c0_i32_9 = arith.constant 0 : i32
      %16 = arith.cmpi eq, %arg1, %c0_i32_9 : i32
      %17 = arith.extui %16 : i1 to i32
      %c0_i32_10 = arith.constant 0 : i32
      %18 = arith.cmpi ne, %17, %c0_i32_10 : i32
      scf.if %18 {
        %c0_11 = arith.constant 0 : index
        %c0_12 = arith.constant 0 : index
        %19 = vector.load %arg7[%c0_11, %c0_12] : memref<8x128xf32, #tpu.memory_space<vmem>>, vector<8x128xf32>
        %20 = vector.shape_cast %19 : vector<8x128xf32> to vector<1x8x128xf32>
        %cst_13 = arith.constant dense<0xFF800000> : vector<1xf32>
        %21 = vector.multi_reduction <maximumf>, %20, %cst_13 [1, 2] : vector<1x8x128xf32> to vector<1xf32>
        %22 = vector.shape_cast %21 : vector<1xf32> to vector<1x1x1xf32>
        %23 = vector.extract %22[0, 0, 0] : f32 from vector<1x1x1xf32>
        %24 = vector.broadcast %23 : f32 to vector<1x1xf32>
        %c0_14 = arith.constant 0 : index
        %c0_15 = arith.constant 0 : index
        %25 = memref.load %arg2[%c0_14, %c0_15] : memref<1x1xf32, #tpu.memory_space<smem>>
        %cst_16 = arith.constant 0.899999976 : f32
        %26 = arith.mulf %cst_16, %25 : f32
        %cst_17 = arith.constant 1.000000e-01 : f32
        %27 = vector.broadcast %cst_17 : f32 to vector<1x1xf32>
        %28 = arith.mulf %27, %24 : vector<1x1xf32>
        %29 = vector.broadcast %26 : f32 to vector<1x1xf32>
        %30 = arith.addf %29, %28 : vector<1x1xf32>
        %31 = math.log %30 : vector<1x1xf32>
        %cst_18 = arith.constant 2.000000e+00 : f32
        %32 = math.log %cst_18 : f32
        %33 = vector.broadcast %32 : f32 to vector<1x1xf32>
        %34 = arith.divf %31, %33 : vector<1x1xf32>
        %35 = math.ceil %34 : vector<1x1xf32>
        %cst_19 = arith.constant 7.000000e+00 : f32
        %36 = vector.broadcast %cst_19 : f32 to vector<1x1xf32>
        %37 = arith.subf %36, %35 : vector<1x1xf32>
        %cst_20 = arith.constant 0.693147182 : f32
        %38 = vector.broadcast %cst_20 : f32 to vector<1x1xf32>
        %39 = arith.mulf %37, %38 : vector<1x1xf32>
        %40 = math.exp %39 : vector<1x1xf32>
        %41 = arith.mulf %30, %40 : vector<1x1xf32>
        %42 = math.ceil %41 : vector<1x1xf32>
        %cst_21 = arith.constant 7.000000e+00 : f32
        %43 = vector.broadcast %cst_21 : f32 to vector<1x1xf32>
        %44 = arith.subf %35, %43 : vector<1x1xf32>
        %cst_22 = arith.constant 0.693147182 : f32
        %45 = vector.broadcast %cst_22 : f32 to vector<1x1xf32>
        %46 = arith.mulf %44, %45 : vector<1x1xf32>
        %47 = math.exp %46 : vector<1x1xf32>
        %48 = arith.mulf %42, %47 : vector<1x1xf32>
        %c0_23 = arith.constant 0 : index
        %c0_24 = arith.constant 0 : index
        %49 = vector.load %arg5[%c0_23, %c0_24] : memref<1x1xf32, #tpu.memory_space<vmem>>, vector<1x1xf32>
        tpu.vector_store %arg5[%c0_23, %c0_24], %48 {strides = array<i32>} : memref<1x1xf32, #tpu.memory_space<vmem>>, vector<1x1xf32>,
        %c0_25 = arith.constant 0 : index
        %c0_26 = arith.constant 0 : index
        %50 = vector.load %arg6[%c0_25, %c0_26] : memref<1x1xf32, #tpu.memory_space<vmem>>, vector<1x1xf32>
        tpu.vector_store %arg6[%c0_25, %c0_26], %35 {strides = array<i32>} : memref<1x1xf32, #tpu.memory_space<vmem>>, vector<1x1xf32>,
        %cst_27 = arith.constant 1.000000e+00 : f32
        %51 = vector.broadcast %cst_27 : f32 to vector<1x1xf32>
        %52 = arith.divf %51, %48 : vector<1x1xf32>
        %c0_28 = arith.constant 0 : index
        %c0_29 = arith.constant 0 : index
        %53 = vector.load %arg8[%c0_28, %c0_29] : memref<1x1xf32, #tpu.memory_space<vmem>>, vector<1x1xf32>
        tpu.vector_store %arg8[%c0_28, %c0_29], %52 {strides = array<i32>} : memref<1x1xf32, #tpu.memory_space<vmem>>, vector<1x1xf32>,
      } else {
      }
    } else {
    }
    %c1_i32 = arith.constant 1 : i32
    %3 = arith.cmpi eq, %arg0, %c1_i32 : i32
    %4 = arith.extui %3 : i1 to i32
    %c0_i32_1 = arith.constant 0 : i32
    %5 = arith.cmpi ne, %4, %c0_i32_1 : i32
    scf.if %5 {
      %c0 = arith.constant 0 : index
      %c0_2 = arith.constant 0 : index
      %6 = vector.load %arg3[%c0, %c0_2] : memref<16x128xf32, #tpu.memory_space<vmem>>, vector<16x128xf32>
      %c0_3 = arith.constant 0 : index
      %c0_4 = arith.constant 0 : index
      %7 = vector.load %arg8[%c0_3, %c0_4] : memref<1x1xf32, #tpu.memory_space<vmem>>, vector<1x1xf32>
      %8 = vector.broadcast %7 : vector<1x1xf32> to vector<16x128xf32>
      %9 = arith.mulf %6, %8 : vector<16x128xf32>
      %c0_5 = arith.constant 0 : index
      %c0_6 = arith.constant 0 : index
      %10 = vector.load %arg4[%c0_5, %c0_6] : memref<16x128xf32, #tpu.memory_space<vmem>>, vector<16x128xf32>
      tpu.vector_store %arg4[%c0_5, %c0_6], %9 {strides = array<i32>} : memref<16x128xf32, #tpu.memory_space<vmem>>, vector<16x128xf32>,
    } else {
    }
    return
  }
  func.func @transform_0(%arg0: i32, %arg1: i32) -> (i32, i32) {
    %c0_i32 = arith.constant 0 : i32
    %c0_i32_0 = arith.constant 0 : i32
    %c0_i32_1 = arith.constant 0 : i32
    return %c0_i32, %c0_i32_0 : i32, i32
  }
  func.func @transform_1(%arg0: i32, %arg1: i32) -> (i32, i32) {
    %c0_i32 = arith.constant 0 : i32
    %c0_i32_0 = arith.constant 0 : i32
    return %arg1, %c0_i32 : i32, i32
  }
  func.func @transform_2(%arg0: i32, %arg1: i32) -> (i32, i32) {
    %0 = arith.muli %arg1, %arg0 : i32
    %c0_i32 = arith.constant 0 : i32
    %c0_i32_0 = arith.constant 0 : i32
    return %0, %c0_i32 : i32, i32
  }
  func.func @transform_3(%arg0: i32, %arg1: i32) -> (i32, i32) {
    %c0_i32 = arith.constant 0 : i32
    %c0_i32_0 = arith.constant 0 : i32
    %c0_i32_1 = arith.constant 0 : i32
    return %c0_i32, %c0_i32_0 : i32, i32
  }
  func.func @transform_4(%arg0: i32, %arg1: i32) -> (i32, i32) {
    %c0_i32 = arith.constant 0 : i32
    %c0_i32_0 = arith.constant 0 : i32
    %c0_i32_1 = arith.constant 0 : i32
    return %c0_i32, %c0_i32_0 : i32, i32
  }
}

</mosaic_0001>

<bundles_post_ra>
// kernel: batchnorm_clamp.1
= control target key start
LH: loop header
LB: loop body
LE: loop exit
PB: predicated region body
PF: predicated region fallthrough
CT: control target
= control target key end

     0   :  { %s704_s0 = inlined_call_operand.<no memory space> [shape: f32[1,1], index: 0, kind: input, shape index: {}]   ;;  %s705_s1 = inlined_call_operand.vmem [shape: f32[16,128], index: 1, kind: input, shape index: {}]   ;;  %s706_s2 = inlined_call_operand.vmem [shape: f32[16,128], index: 2, kind: output, shape index: {0}]   ;;  %s707_s3 = inlined_call_operand.hbm [shape: f32[1,1], index: 3, kind: output, shape index: {1}]   ;;  %s708_s4 = inlined_call_operand.hbm [shape: f32[1,1], index: 4, kind: output, shape index: {2}]  }
   0x1   :  { %10 = sst [smem:[#allocation4]] %s704_s0 }
   0x2   :  { %11 = vsyncpa [#allocation6], 0 }
   0x3   :  { %12 = vsyncpa [#allocation8], 0  ;;  %s593_s17 = smov 0   ;;  %s595_s18 = smov 0  }
   0x4   :  { %s597_s19 = smov 0  }
   0x5 LB: > { %s411_s0 = sadd.s32 4294967295, %s560_s19   ;;  %s30_s20 = sadd.s32 1, %s556_s18  ;;  %s560_s19 = sphi %s597_s19, %s18_s19   ;;  %s556_s18 = sphi %s595_s18, %s711_s18   ;;  %s552_s17 = sphi %s593_s17, %s710_s17  }
   0x6   : > { %p32_p0 = scmp.ge.s32.totalorder %s30_s20, 2  ;;  %p415_p1 = scmp.ge.s32.totalorder %s560_s19, 1 }
   0x7   : > { %p175_p2 = scmp.lt.s32.totalorder %s560_s19, 3 }
   0x8   : > { %s713_s20 = smov (%p32_p0, %s30_s20), 0 }
   0x9   : > { %p176_p3 = pnand %p415_p1, %p175_p2 }
   0xa   : > { %p416_p4 = scmp.ne.s32.totalorder (!%p176_p3), %s552_s17, 0 }
   0xb   : > { %179 = sbr.rel (%p176_p3) target bundleno = 472 (0x1d8), region = 28 }
  0x12   : > { %219 = sbr.rel (%p416_p4) target bundleno = 286 (0x11e), region = 32  ;;  %v225_v0 = vld [vmem:[%s705_s1] sm:$0xff] (!%p416_p4)  ;;  %v226_v1 = vld [vmem:[%s705_s1 + $0x8] sm:$0xff] (!%p416_p4)  ;;  %s247_s25 = sld [smem:[#allocation4]] (!%p416_p4)  ;;  %vm268_vm0 = vcmask (!%p416_p4), 0  }
  0x13   : > { %v227_v2 = vand.u32 (!%p416_p4), 2147483647, %v225_v0  ;;  %v228_v3 = vand.u32 (!%p416_p4), 2147483647, %v226_v1 }
  0x15   : > { %v229_v4 = vmax.f32.f32 (!%p416_p4), %v227_v2, %v228_v3 }
  0x17   : > { %v231_v5 = vmax.f32 (!%p416_p4), %v229_v4, 0.0 }
  0x18   : > { %s248_s26 = smul.f32 (!%p416_p4), 0.9, %s247_s25 }
  0x19   : > { %237 = vmax.xlane.f32.xlu0 %v231_v5 }
  0x1a   : > { %v250_v14 = vstv %s248_s26 }
  0xa6   : > { %v238_v6 = vpop.xlane.xlu0 %237 }
  0xa7   : > { %v239_v7 = vrot.slane %v238_v6, 4 }
  0xa9   : > { %v240_v8 = vmax.f32 %v238_v6, %v239_v7 }
  0xab   : > { %v241_v9 = vrot.slane %v240_v8, 2 }
  0xad   : > { %v242_v10 = vmax.f32 %v240_v8, %v241_v9 }
  0xaf   : > { %v243_v11 = vrot.slane %v242_v10, 1 }
  0xb1   : > { %v244_v12 = vmax.f32 %v242_v10, %v243_v11 }
  0xb3   : > { %428 = vpush %v244_v12 }
  0xe4   : > { %s429_s27 = spop %428 }
  0xe5   : > { %v246_v13 = vstv %s429_s27 }
  0xe6   : > { %v249_v15 = vmul.f32 0.1, %v246_v13 }
  0xe8   : > { %v251_v16 = vadd.f32 %v250_v14, %v249_v15 }
  0xea   : > { %469 = vlog2.f32 %v251_v16 }
  0xf4   : > { %v470_v17 = vpop.eup %469 }
  0xf5   : > { %v253_v18 = vmul.f32 0.6931472, %v470_v17 }
  0xf7   : > { %v255_v19 = vmul.f32 1.442695, %v253_v18 }
  0xf9   : > { %v256_v20 = vceil.f32 %v255_v19 }
  0xfb   : > { %v257_v21 = vsub.f32 7.0, %v256_v20  ;;  %v417_v22 = vadd.f32 -7.0, %v256_v20  ;;  %270 = vst.msk [vmem:[#allocation7] sm:$0x1] %vm268_vm0, %v256_v20 }
  0xfd   : > { %v258_v23 = vmul.f32 0.6931472, %v257_v21  ;;  %v264_v24 = vmul.f32 0.6931472, %v417_v22 }
  0xff   : > { %v259_v25 = vmul.f32 1.442695, %v258_v23  ;;  %v265_v26 = vmul.f32 1.442695, %v264_v24 }
 0x101   : > { %471 = vpow2.f32 %v259_v25 }
 0x102   : > { %473 = vpow2.f32 %v265_v26 }
 0x10b   : > { %v472_v27 = vpop.eup %471 }
 0x10c   : > { %v261_v28 = vmul.f32 %v472_v27, %v251_v16  ;;  %v474_v30 = vpop.eup %473 }
 0x10e   : > { %v262_v29 = vceil.f32 %v261_v28 }
 0x110   : > { %v267_v31 = vmul.f32 %v474_v30, %v262_v29 }
 0x112   : > { %269 = vst.msk [vmem:[#allocation5] sm:$0x1] %vm268_vm0, %v267_v31  ;;  %475 = vrcp.f32 %v267_v31 }
 0x11c   : > { %v476_v32 = vpop.eup %475 }
 0x11d   : > { %273 = vst.msk [vmem:[#allocation3] sm:$0x1] %vm268_vm0, %v476_v32 }
 0x11e PF: > { %p418_p5 = scmp.ne.s32.totalorder %s552_s17, 1 }
 0x11f   : > { %v562_v34 = vmov (!%p418_p5), 0   ;;  %v278_v35 = vld [vmem:[%s705_s1] sm:$0xff] (!%p418_p5)  ;;  %v279_v36 = vld [vmem:[%s705_s1 + $0x8] sm:$0xff] (!%p418_p5) }
 0x120   : > { %277 = sbr.rel (%p418_p5) target bundleno = 424 (0x1a8), region = 44  ;;  %477 = vset.pattern.permute.xlu0 (!%p418_p5), %v562_v34 }
 0x124   : > { %v419_v33 = vld [vmem:[#allocation3] ss:$0 sm:$0xff] (!%p418_p5) }
 0x125   : > { %287 = vperm.xlu0 (!%p418_p5), %477, %v419_v33  }
 0x1a4   : > { %v288_v37 = vpop.permute.xlu0 %287 }
 0x1a5   : > { %v290_v38 = vmul.f32 %v288_v37, %v278_v35  ;;  %v291_v39 = vmul.f32 %v288_v37, %v279_v36 }
 0x1a7   : > { %292 = vst [vmem:[%s706_s2] sm:$0xff] %v290_v38  ;;  %293 = vst [vmem:[%s706_s2 + $0x8] sm:$0xff] %v291_v39 }
 0x1a8 PF: > { %p639_p6 = scmp.eq.s32.totalorder %s411_s0, 1  ;;  %s563_s11 = smov [#allocation5]  }
 0x1a9   : > { %s312_s12 = sshll.u32 %s563_s11, 4  ;;  %s564_s13 = smov [#allocation7]   ;;  %s313_s12 = int_to_ptr.vmem [resolvable:$true] %s312_s12 }
 0x1aa   : > { %s323_s14 = sshll.u32 %s564_s13, 4  ;;  %s478_s15 = scalar_lea.vmem %s313_s12, 16  ;;  %s643_s14 = int_to_ptr.vmem [resolvable:$true] %s323_s14 }
 0x1ab   : > { %p479_p7 = scmp.ne.s32.totalorder %s313_s12, %s478_s15  ;;  %s484_s16 = scalar_lea.vmem %s313_s12, 32 }
 0x1ac   : > { %p485_p10 = scmp.lt.s32.totalorder %s313_s12, %s313_s12  ;;  %p486_p11 = scmp.lt.s32.totalorder %s484_s16, %s478_s15 }
 0x1ad   : > { %p480_p8 = pnand %p479_p7, %p639_p6 }
 0x1ae   : > { %p487_p12 = por %p486_p11, %p485_p10 }
 0x1af   : > { %p481_p9 = pneg %p480_p8 }
 0x1b1   : > { %p488_p13 = pnand %p487_p12, %p481_p9 }
 0x1b3   : > { %491 = shalt.err (!%p488_p13)
}
 0x1b4   : > { %s492_s21 = scalar_lea.hbm %s707_s3, 16 }
 0x1b5   : > { %p493_p0 = scmp.ne.s32.totalorder %s707_s3, %s492_s21  ;;  %p498_p3 = scmp.lt.u32.totalorder %s492_s21, %s707_s3 }
 0x1b7   : > { %p494_p1 = pnand %p493_p0, %p639_p6 }
 0x1b9   : > { %p495_p2 = pneg %p494_p1 }
 0x1bb   : > { %p500_p4 = pnand %p498_p3, %p495_p2 }
 0x1bd   : > { %503 = shalt.err (!%p500_p4)
}
 0x1be   : > { %431 = dma.vmem_to_hbm [thread:$0]  (%p639_p6), %s313_s12, 16, %s707_s3, [#allocation6]  }
 0x1bf   : > { %s504_s28 = scalar_lea.vmem %s643_s14, 16  ;;  %s510_s29 = scalar_lea.vmem %s643_s14, 32 }
 0x1c0   : > { %p505_p5 = scmp.ne.s32.totalorder %s643_s14, %s504_s28  ;;  %p511_p9 = scmp.lt.s32.totalorder %s643_s14, %s643_s14 }
 0x1c1   : > { %p512_p10 = scmp.lt.s32.totalorder %s510_s29, %s504_s28 }
 0x1c2   : > { %p506_p7 = pnand %p505_p5, %p639_p6 }
 0x1c3   : > { %p513_p11 = por %p512_p10, %p511_p9 }
 0x1c4   : > { %p507_p8 = pneg %p506_p7 }
 0x1c6   : > { %p514_p12 = pnand %p513_p11, %p507_p8 }
 0x1c8   : > { %517 = shalt.err (!%p514_p12)
}
 0x1c9   : > { %s518_s6 = scalar_lea.hbm %s708_s4, 16 }
 0x1ca   : > { %p519_p13 = scmp.ne.s32.totalorder %s708_s4, %s518_s6  ;;  %p524_p2 = scmp.lt.u32.totalorder %s518_s6, %s708_s4 }
 0x1cc   : > { %p520_p0 = pnand %p519_p13, %p639_p6 }
 0x1ce   : > { %p521_p1 = pneg %p520_p0 }
 0x1d0   : > { %p526_p3 = pnand %p524_p2, %p521_p1 }
 0x1d2   : > { %529 = shalt.err (!%p526_p3)
}
 0x1d3   : > { %433 = dma.vmem_to_hbm [thread:$0]  (%p639_p6), %s643_s14, 16, %s708_s4, [#allocation8]  }
 0x1d4   : > { %543 = dma.done.wait (%p639_p6), [#allocation6], 16  }
 0x1d5   : > { %545 = vsyncadd (%p639_p6), [#allocation6], 4294967280 }
 0x1d6   : > { %547 = dma.done.wait (%p639_p6), [#allocation8], 16  }
 0x1d7   : > { %549 = vsyncadd (%p639_p6), [#allocation8], 4294967280 }
 0x1d8 PF: > { %s18_s19 = sadd.s32 1, %s560_s19   ;;  %s710_s17 = smov %s556_s18 }
 0x1d9   : > { %p15_p4 = scmp.ge.s32.totalorder %s18_s19, 4   ;;  %s711_s18 = smov %s713_s20 }
 0x1db   :  { %17 = sbr.rel (!%p15_p4) target bundleno = 5 (0x5), region = 91 }
 0x1e2   :  { %349 = vsyncpa [#allocation6], 1 }
 0x1e3   :  { %351 = vsyncpa [#allocation6 + $0x1], 1 }
 0x1e4   :  { %352 = vsyncpa [#allocation8], 1 }

</bundles_post_ra>
